<compile_context>
chip_gen: v5e
topology: v5e:2x2
jax: 0.10.0
libtpu: 0.0.40
codegen_flags: <defaults>
</compile_context>

<pallas_src>
import functools

import jax
import jax.numpy as jnp
from jax.experimental import pallas as pl
from jax.experimental.pallas import tpu as pltpu


def _cdiv(a, b):
    return -(-a // b)


def _round_up(x, m):
    return _cdiv(x, m) * m


def _balanced(total, cap, mult):
    """Split `total` into equal tiles (multiples of `mult`, each <= cap) with
    minimal padding. Returns (tile, num_tiles, padded_total)."""
    total_r = _round_up(max(total, 1), mult)
    cap = max(mult, (min(cap, total_r) // mult) * mult)
    num = _cdiv(total_r, cap)
    tile = _round_up(_cdiv(total_r, num), mult)
    return tile, num, tile * num


def _vmem_capacity_bytes():
    try:
        cap = int(pltpu.get_tpu_info().vmem_capacity_bytes)
        if cap > 0:
            return cap
    except Exception:
        pass
    return 64 << 20  # conservative fallback (v7x per-TensorCore)


# ---------------------------------------------------------------------------
# Kernels
# ---------------------------------------------------------------------------
def _ffn_kernel_resident(x_ref, w1_ref, b1_ref, w2_ref, b2_ref, o_ref):
    # Whole (padded) weights are resident in VMEM: single pass, no accumulator,
    # output written directly (saves three full (tm, d_p) f32 passes per tile).
    h = jnp.dot(x_ref[...], w1_ref[...], preferred_element_type=jnp.float32)
    h = jnp.maximum(h + b1_ref[...].astype(jnp.float32), 0.0)
    out = jnp.dot(h.astype(w2_ref.dtype), w2_ref[...],
                  preferred_element_type=jnp.float32)
    o_ref[...] = (out + b2_ref[...].astype(jnp.float32)).astype(o_ref.dtype)


def _ffn_kernel_stream(x_ref, w1_ref, b1_ref, w2_ref, b2_ref, o_ref, acc_ref,
                       *, tk):
    # d_inner tiled along the second ("arbitrary") grid axis; f32 accumulator in
    # VMEM scratch; bias-add + store on the last k step (pattern P3).
    k = pl.program_id(1)

    @pl.when(k == 0)
    def _():
        acc_ref[...] = jnp.zeros_like(acc_ref)

    off = pl.multiple_of(k * tk, 128)
    b1 = b1_ref[:, pl.ds(off, tk)].astype(jnp.float32)

    h = jnp.dot(x_ref[...], w1_ref[...], preferred_element_type=jnp.float32)
    h = jnp.maximum(h + b1, 0.0)
    acc_ref[...] += jnp.dot(h.astype(w2_ref.dtype), w2_ref[...],
                            preferred_element_type=jnp.float32)

    @pl.when(k == pl.num_programs(1) - 1)
    def _():
        o_ref[...] = (acc_ref[...]
                      + b2_ref[...].astype(jnp.float32)).astype(o_ref.dtype)


# ---------------------------------------------------------------------------
# Wrapper
# ---------------------------------------------------------------------------
def positionwise_ffn(x, w1, b1, w2, b2, *, compute_dtype=None,
                     tm_max=1024, tk_max=2048, allow_resident=True):
    """x: (B, L, d). w1: (d, d_inner), b1: (d_inner,), w2: (d_inner, d), b2: (d,)."""
    B, L, d = x.shape
    d_inner = w1.shape[1]
    M = B * L
    out_dtype = x.dtype

    # Optional reduced-precision compute (bf16 recommended; f32 accumulation kept).
    if compute_dtype is not None:
        x = x.astype(compute_dtype)
        w1 = w1.astype(compute_dtype)
        w2 = w2.astype(compute_dtype)

    x_it = jnp.dtype(x.dtype).itemsize
    w_it = jnp.dtype(w1.dtype).itemsize
    o_it = jnp.dtype(out_dtype).itemsize
    b_it = 4  # biases are promoted to f32 in-kernel; budget their f32 footprint

    d_p = _round_up(d, 128)            # lane-dense feature dim
    di_128 = _round_up(d_inner, 128)   # lane-dense inner dim (before k-tiling)

    vmem_cap = _vmem_capacity_bytes()
    budget = vmem_cap - (8 << 20)      # headroom for Mosaic internal scratch

    def fit_tm(tk, num_k):
        # Largest row tile (multiple of 8) whose full pipeline footprint fits.
        wk_bufs = 1 if num_k == 1 else 2
        fixed = (wk_bufs * 2 * d_p * tk * w_it       # W1 + W2 slices (+ dbl buf)
                 + di_128 * b_it + d_p * b_it)       # b1 (full) + b2
        per_row = (2 * d_p * x_it                    # x tile, double buffered
                   + 2 * d_p * o_it                  # out tile, double buffered
                   + tk * 4                          # f32 h intermediate
                   + (d_p * 4 if num_k > 1 else 0))  # f32 accumulator scratch
        avail = budget - fixed
        return 0 if avail <= 0 else (int(avail) // per_row) // 8 * 8

    # ---- choose the d_inner tiling -----------------------------------------
    tm_needed = min(_round_up(M, 8), 256)
    if allow_resident and fit_tm(di_128, 1) >= tm_needed:
        # Weights resident for the whole kernel: zero HBM re-streaming.
        tk, num_k, di_p = di_128, 1, di_128
    else:
        tk = None
        caps = sorted({min(c, tk_max) for c in (4096, 2048, 1024, 512, 256, 128)
                       if min(c, tk_max) >= 128}, reverse=True) or [128]
        want_tm = min(_round_up(M, 8), 512)  # big enough to hide weight DMA
        for cap in caps:
            t, nk, dpad = _balanced(di_128, cap, 128)
            if fit_tm(t, nk) >= want_tm:
                tk, num_k, di_p = t, nk, dpad
                break
        if tk is None:
            tk, num_k, di_p = _balanced(di_128, 128, 128)

    # ---- choose the row (token) tiling --------------------------------------
    tm_cap = max(8, min(fit_tm(tk, num_k), tm_max))
    tm, num_m, m_p = _balanced(M, tm_cap, 8)
    if num_m == 1 and M > 16:
        # v7x has two TensorCores; give the "parallel" m axis >= 2 steps so it
        # can be sharded across them (negligible cost on single-TC chips).
        tm, num_m, m_p = _balanced(M, max(8, _round_up(_cdiv(M, 2), 8)), 8)

    # ---- zero-pad operands (padding contributes exactly zero) ---------------
    xf = jnp.pad(x.reshape(M, d), ((0, m_p - M), (0, d_p - d)))
    w1p = jnp.pad(w1, ((0, d_p - d), (0, di_p - d_inner)))
    b1p = jnp.pad(b1, (0, di_p - d_inner)).reshape(1, di_p)
    w2p = jnp.pad(w2, ((0, di_p - d_inner), (0, d_p - d)))
    b2p = jnp.pad(b2, (0, d_p - d)).reshape(1, d_p)

    # ---- explicit scoped-VMEM budget (never above physical capacity) --------
    wk_bufs = 1 if num_k == 1 else 2
    need = (wk_bufs * 2 * d_p * tk * w_it + di_p * b_it + d_p * b_it
            + tm * (2 * d_p * x_it + 2 * d_p * o_it + tk * 4
                    + (d_p * 4 if num_k > 1 else 0)))
    vmem_limit = int(min(vmem_cap, max(need + (8 << 20), 32 << 20)))

    if num_k == 1:
        grid = (num_m,)
        in_specs = [
            pl.BlockSpec((tm, d_p), lambda i: (i, 0)),
            pl.BlockSpec((d_p, di_p), lambda i: (0, 0),
                         pipeline_mode=pl.Buffered(1)),      # W1 (resident)
            pl.BlockSpec((1, di_p), lambda i: (0, 0),
                         pipeline_mode=pl.Buffered(1)),       # b1
            pl.BlockSpec((di_p, d_p), lambda i: (0, 0),
                         pipeline_mode=pl.Buffered(1)),       # W2 (resident)
            pl.BlockSpec((1, d_p), lambda i: (0, 0),
                         pipeline_mode=pl.Buffered(1)),       # b2
        ]
        out_specs = pl.BlockSpec((tm, d_p), lambda i: (i, 0))
        scratch = []
        kernel = _ffn_kernel_resident
        semantics = ("parallel",)
    else:
        grid = (num_m, num_k)
        in_specs = [
            pl.BlockSpec((tm, d_p), lambda i, k: (i, 0)),     # token rows
            pl.BlockSpec((d_p, tk), lambda i, k: (0, k)),     # W1 slice (dbl buf)
            pl.BlockSpec((1, di_p), lambda i, k: (0, 0),
                         pipeline_mode=pl.Buffered(1)),       # b1 (full, constant)
            pl.BlockSpec((tk, d_p), lambda i, k: (k, 0)),     # W2 slice (dbl buf)
            pl.BlockSpec((1, d_p), lambda i, k: (0, 0),
                         pipeline_mode=pl.Buffered(1)),       # b2 (constant)
        ]
        out_specs = pl.BlockSpec((tm, d_p), lambda i, k: (i, 0))
        scratch = [pltpu.VMEM((tm, d_p), jnp.float32)]
        kernel = functools.partial(_ffn_kernel_stream, tk=tk)
        semantics = ("parallel", "arbitrary")

    out_flat = pl.pallas_call(
        kernel,
        out_shape=jax.ShapeDtypeStruct((m_p, d_p), out_dtype),
        grid_spec=pltpu.PrefetchScalarGridSpec(
            num_scalar_prefetch=0,
            grid=grid,
            in_specs=in_specs,
            out_specs=out_specs,
            scratch_shapes=scratch,
        ),
        compiler_params=pltpu.CompilerParams(
            dimension_semantics=semantics,
            vmem_limit_bytes=vmem_limit,
        ),
    )(xf, w1p, b1p, w2p, b2p)

    return out_flat[:M, :d].reshape(B, L, d)


# ---------------------------------------------------------------------------
# Self-test
# ---------------------------------------------------------------------------
if __name__ == "__main__":
    def reference_ffn(x, w1, b1, w2, b2):
        h = jnp.maximum(jnp.einsum("bld,df->blf", x, w1) + b1, 0.0)
        return jnp.einsum("blf,fd->bld", h, w2) + b2

    key = jax.random.PRNGKey(0)

    # --- small resident-path test (f32) --------------------------------------
    B, L, d, d_inner = 2, 8, 32, 64
    kx, kw1, kb1, kw2, kb2 = jax.random.split(key, 5)
    x = jax.random.normal(kx, (B, L, d), dtype=jnp.float32)
    # Conv1d(d, d_inner, 1).weight has shape (d_inner, d, 1); W1 is its squeezed
    # transpose (d, d_inner) -- identical per-position math.
    w1 = jax.random.normal(kw1, (d, d_inner), dtype=jnp.float32) * 0.1
    b1 = jax.random.normal(kb1, (d_inner,), dtype=jnp.float32) * 0.1
    w2 = jax.random.normal(kw2, (d_inner, d), dtype=jnp.float32) * 0.1
    b2 = jax.random.normal(kb2, (d,), dtype=jnp.float32) * 0.1

    out = jax.block_until_ready(positionwise_ffn(x, w1, b1, w2, b2))
    ref = reference_ffn(x, w1, b1, w2, b2)
    assert out.shape == (B, L, d)
    assert jnp.allclose(out, ref, atol=1e-4, rtol=1e-4), "resident f32 mismatch"

    # --- same weights, bf16 compute (f32 accumulation preserved) -------------
    out_bf = jax.block_until_ready(
        positionwise_ffn(x, w1, b1, w2, b2, compute_dtype=jnp.bfloat16))
    assert jnp.allclose(out_bf, ref, atol=5e-2, rtol=5e-2), "bf16 mismatch"

    # --- streaming path (num_k > 1, accumulator kernel) ----------------------
    d_inner2 = 256
    kw1b, kb1b, kw2b, kb2b = jax.random.split(jax.random.PRNGKey(1), 4)
    w1b = jax.random.normal(kw1b, (d, d_inner2), dtype=jnp.float32) * 0.1
    b1b = jax.random.normal(kb1b, (d_inner2,), dtype=jnp.float32) * 0.1
    w2b = jax.random.normal(kw2b, (d_inner2, d), dtype=jnp.float32) * 0.1
    b2b = jax.random.normal(kb2b, (d,), dtype=jnp.float32) * 0.1
    out2 = jax.block_until_ready(
        positionwise_ffn(x, w1b, b1b, w2b, b2b,
                         allow_resident=False, tk_max=128))
    ref2 = reference_ffn(x, w1b, b1b, w2b, b2b)
    assert jnp.allclose(out2, ref2, atol=1e-3, rtol=1e-3), "streaming mismatch"

    print("KERNEL_OK")
</pallas_src>

<mosaic_0001>
module attributes {stable_mosaic.version = 11 : i64} {
  func.func @_ffn_kernel_resident(%arg0: i32, %arg1: memref<16x128xf32, #tpu.memory_space<vmem>>, %arg2: memref<128x128xf32, #tpu.memory_space<vmem>>, %arg3: memref<1x128xf32, #tpu.memory_space<vmem>>, %arg4: memref<128x128xf32, #tpu.memory_space<vmem>>, %arg5: memref<1x128xf32, #tpu.memory_space<vmem>>, %arg6: memref<16x128xf32, #tpu.memory_space<vmem>>) attributes {dimension_semantics = [#tpu.dimension_semantics<parallel>], iteration_bounds = array<i64: 1>, scalar_prefetch = 0 : i64, scratch_operands = 0 : i64, tpu.core_type = #tpu.core_type<tc>, window_params = [{transform_indices = @transform_0, window_bounds = array<i64: 16, 128>}, {pipeline_mode = #tpu.pipeline_mode<synchronous>, transform_indices = @transform_1, window_bounds = array<i64: 128, 128>}, {pipeline_mode = #tpu.pipeline_mode<synchronous>, transform_indices = @transform_2, window_bounds = array<i64: 1, 128>}, {pipeline_mode = #tpu.pipeline_mode<synchronous>, transform_indices = @transform_3, window_bounds = array<i64: 128, 128>}, {pipeline_mode = #tpu.pipeline_mode<synchronous>, transform_indices = @transform_4, window_bounds = array<i64: 1, 128>}, {transform_indices = @transform_5, window_bounds = array<i64: 16, 128>}]} {
    %c0 = arith.constant 0 : index
    %c0_0 = arith.constant 0 : index
    %0 = vector.load %arg1[%c0, %c0_0] : memref<16x128xf32, #tpu.memory_space<vmem>>, vector<16x128xf32>
    %c0_1 = arith.constant 0 : index
    %c0_2 = arith.constant 0 : index
    %1 = vector.load %arg2[%c0_1, %c0_2] : memref<128x128xf32, #tpu.memory_space<vmem>>, vector<128x128xf32>
    %cst = arith.constant dense<0.000000e+00> : vector<16x128xf32>
    %2 = tpu.matmul %0, %1, %cst {dimension_numbers = #tpu.dot_dimension_numbers<[1], [0], [0], [1], [0, 0, 1, 1], [], []>} : vector<16x128xf32>, vector<128x128xf32>, vector<16x128xf32> -> vector<16x128xf32>
    %c0_3 = arith.constant 0 : index
    %c0_4 = arith.constant 0 : index
    %3 = vector.load %arg3[%c0_3, %c0_4] : memref<1x128xf32, #tpu.memory_space<vmem>>, vector<1x128xf32>
    %4 = vector.broadcast %3 : vector<1x128xf32> to vector<16x128xf32>
    %5 = arith.addf %2, %4 : vector<16x128xf32>
    %cst_5 = arith.constant 0.000000e+00 : f32
    %6 = vector.broadcast %cst_5 : f32 to vector<16x128xf32>
    %7 = arith.maximumf %5, %6 : vector<16x128xf32>
    %c0_6 = arith.constant 0 : index
    %c0_7 = arith.constant 0 : index
    %8 = vector.load %arg4[%c0_6, %c0_7] : memref<128x128xf32, #tpu.memory_space<vmem>>, vector<128x128xf32>
    %cst_8 = arith.constant dense<0.000000e+00> : vector<16x128xf32>
    %9 = tpu.matmul %7, %8, %cst_8 {dimension_numbers = #tpu.dot_dimension_numbers<[1], [0], [0], [1], [0, 0, 1, 1], [], []>} : vector<16x128xf32>, vector<128x128xf32>, vector<16x128xf32> -> vector<16x128xf32>
    %c0_9 = arith.constant 0 : index
    %c0_10 = arith.constant 0 : index
    %10 = vector.load %arg5[%c0_9, %c0_10] : memref<1x128xf32, #tpu.memory_space<vmem>>, vector<1x128xf32>
    %11 = vector.broadcast %10 : vector<1x128xf32> to vector<16x128xf32>
    %12 = arith.addf %9, %11 : vector<16x128xf32>
    %c0_11 = arith.constant 0 : index
    %c0_12 = arith.constant 0 : index
    %13 = vector.load %arg6[%c0_11, %c0_12] : memref<16x128xf32, #tpu.memory_space<vmem>>, vector<16x128xf32>
    tpu.vector_store %arg6[%c0_11, %c0_12], %12 {strides = array<i32>} : memref<16x128xf32, #tpu.memory_space<vmem>>, vector<16x128xf32>,
    return
  }
  func.func @transform_0(%arg0: i32) -> (i32, i32) {
    %c0_i32 = arith.constant 0 : i32
    %c0_i32_0 = arith.constant 0 : i32
    return %arg0, %c0_i32 : i32, i32
  }
  func.func @transform_1(%arg0: i32) -> (i32, i32) {
    %c0_i32 = arith.constant 0 : i32
    %c0_i32_0 = arith.constant 0 : i32
    %c0_i32_1 = arith.constant 0 : i32
    return %c0_i32, %c0_i32_0 : i32, i32
  }
  func.func @transform_2(%arg0: i32) -> (i32, i32) {
    %c0_i32 = arith.constant 0 : i32
    %c0_i32_0 = arith.constant 0 : i32
    %c0_i32_1 = arith.constant 0 : i32
    return %c0_i32, %c0_i32_0 : i32, i32
  }
  func.func @transform_3(%arg0: i32) -> (i32, i32) {
    %c0_i32 = arith.constant 0 : i32
    %c0_i32_0 = arith.constant 0 : i32
    %c0_i32_1 = arith.constant 0 : i32
    return %c0_i32, %c0_i32_0 : i32, i32
  }
  func.func @transform_4(%arg0: i32) -> (i32, i32) {
    %c0_i32 = arith.constant 0 : i32
    %c0_i32_0 = arith.constant 0 : i32
    %c0_i32_1 = arith.constant 0 : i32
    return %c0_i32, %c0_i32_0 : i32, i32
  }
  func.func @transform_5(%arg0: i32) -> (i32, i32) {
    %c0_i32 = arith.constant 0 : i32
    %c0_i32_0 = arith.constant 0 : i32
    return %arg0, %c0_i32 : i32, i32
  }
}

</mosaic_0001>

<bundles_post_ra>
// kernel: tpu_custom_call.1
= control target key start
LH: loop header
LB: loop body
LE: loop exit
PB: predicated region body
PF: predicated region fallthrough
CT: control target
= control target key end

     0   :  { %10 = vsyncpa [#allocation3], 0  ;;  %s388_s0 = inlined_call_operand.hbm [shape: f32[16,128], index: 0, kind: input, shape index: {}]   ;;  %s389_s1 = inlined_call_operand.hbm [shape: f32[128,128], index: 1, kind: input, shape index: {}]   ;;  %s390_s2 = inlined_call_operand.vmem [shape: f32[1,128], index: 2, kind: input, shape index: {}]   ;;  %s391_s3 = inlined_call_operand.hbm [shape: f32[128,128], index: 3, kind: input, shape index: {}]   ;;  %s392_s4 = inlined_call_operand.vmem [shape: f32[1,128], index: 4, kind: input, shape index: {}]   ;;  %s393_s5 = inlined_call_operand.hbm [shape: f32[16,128], index: 5, kind: output, shape index: {}]  }
   0x1   :  { %11 = vsyncpa [#allocation6], 0 }
   0x2   :  { %12 = vsyncpa [#allocation4], 0  ;;  %s30_s20 = sshll.u32 %s389_s1, 4  ;;  %s322_s21 = smov [#allocation5]   ;;  %s31_s20 = int_to_ptr.hbm [resolvable:$true] %s30_s20 }
   0x3   :  { %s32_s22 = sshll.u32 %s322_s21, 4  ;;  %s17_s25 = sshll.u32 %s388_s0, 4  ;;  %s33_s22 = int_to_ptr.vmem [resolvable:$true] %s32_s22  ;;  %s18_s25 = int_to_ptr.hbm [resolvable:$true] %s17_s25 }
   0x4   :  { %s323_s26 = smov 128   ;;  %s324_s27 = smov 8  }
   0x5   :  { %38 = dma.hbm_to_vmem [thread:$0]  %s31_s20, 2048, %s33_s22, [#allocation6], %s323_s26, %s323_s26, %s324_s27  }
   0x6   :  { %s325_s28 = smov [#allocation2]   ;;  %s45_s1 = sshll.u32 %s391_s3, 4  ;;  %s46_s1 = int_to_ptr.hbm [resolvable:$true] %s45_s1 }
   0x7   :  { %s19_s29 = sshll.u32 %s325_s28, 4  ;;  %s326_s0 = smov [#allocation7]   ;;  %s20_s29 = int_to_ptr.vmem [resolvable:$true] %s19_s29 }
   0x8   :  { %25 = dma.hbm_to_vmem [thread:$0]  %s18_s25, 256, %s20_s29, [#allocation3], %s323_s26, %s323_s26, %s324_s27  }
   0x9   :  { %s47_s7 = sshll.u32 %s326_s0, 4  ;;  %s48_s7 = int_to_ptr.vmem [resolvable:$true] %s47_s7 }
   0xa   :  { %53 = dma.hbm_to_vmem [thread:$0]  %s46_s1, 2048, %s48_s7, [#allocation6], %s323_s26, %s323_s26, %s324_s27  }
   0xb   :  { %316 = dma.done.wait [#allocation3], 256  }
   0xc   :  { %317 = vsyncadd [#allocation3], 4294967040 }
   0xd   :  { %318 = dma.done.wait [#allocation6], 4096  }
   0xe   :  { %319 = vsyncadd [#allocation6], 4294963200  ;;  %v85_v0 = vld [vmem:[#allocation5 + $0x78] sm:$0xff]  ;;  %v84_v1 = vld [vmem:[#allocation5 + $0x70] sm:$0xff]  ;;  %s327_s11 = smov [#allocation8]  }
   0xf   :  { %180 = vmatpush.msra.mxu2 %v85_v0  ;;  %90 = vmatpush.msra.mxu0 %v85_v0  ;;  %v83_v2 = vld [vmem:[#allocation5 + $0x68] sm:$0xff]  ;;  %v82_v3 = vld [vmem:[#allocation5 + $0x60] sm:$0xff]  ;;  %v81_v4 = vld [vmem:[#allocation5 + $0x58] sm:$0xff]  ;;  %s164_s12 = sshll.u32 %s327_s11, 4  ;;  %s165_s12 = int_to_ptr.vmem [resolvable:$true] %s164_s12 }
  0x10   :  { %v130_v5 = vld [vmem:[#allocation7 + $0x78] sm:$0xff]  ;;  %v129_v6 = vld [vmem:[#allocation7 + $0x70] sm:$0xff]  ;;  %v128_v8 = vld [vmem:[#allocation7 + $0x68] sm:$0xff] }
  0x11   :  { %181 = vmatpush.msra.mxu2 %v84_v1  ;;  %91 = vmatpush.msra.mxu0 %v84_v1  ;;  %v80_v7 = vld [vmem:[#allocation5 + $0x50] sm:$0xff]  ;;  %v79_v9 = vld [vmem:[#allocation5 + $0x48] sm:$0xff]  ;;  %v127_v10 = vld [vmem:[#allocation7 + $0x60] sm:$0xff] }
  0x12   :  { %196 = vmatpush.msra.mxu3 %v130_v5  ;;  %135 = vmatpush.msra.mxu1 %v130_v5  ;;  %v78_v11 = vld [vmem:[#allocation5 + $0x40] sm:$0xff]  ;;  %v126_v12 = vld [vmem:[#allocation7 + $0x58] sm:$0xff]  ;;  %v125_v14 = vld [vmem:[#allocation7 + $0x50] sm:$0xff] }
  0x13   :  { %182 = vmatpush.msra.mxu2 %v83_v2  ;;  %92 = vmatpush.msra.mxu0 %v83_v2  ;;  %v77_v13 = vld [vmem:[#allocation5 + $0x38] sm:$0xff]  ;;  %v76_v15 = vld [vmem:[#allocation5 + $0x30] sm:$0xff]  ;;  %v124_v16 = vld [vmem:[#allocation7 + $0x48] sm:$0xff] }
  0x14   :  { %197 = vmatpush.msra.mxu3 %v129_v6  ;;  %136 = vmatpush.msra.mxu1 %v129_v6  ;;  %v75_v17 = vld [vmem:[#allocation5 + $0x28] sm:$0xff]  ;;  %v123_v18 = vld [vmem:[#allocation7 + $0x40] sm:$0xff]  ;;  %v122_v20 = vld [vmem:[#allocation7 + $0x38] sm:$0xff] }
  0x15   :  { %183 = vmatpush.msra.mxu2 %v82_v3  ;;  %93 = vmatpush.msra.mxu0 %v82_v3  ;;  %v74_v19 = vld [vmem:[#allocation5 + $0x20] sm:$0xff]  ;;  %v73_v21 = vld [vmem:[#allocation5 + $0x18] sm:$0xff]  ;;  %v121_v22 = vld [vmem:[#allocation7 + $0x30] sm:$0xff] }
  0x16   :  { %198 = vmatpush.msra.mxu3 %v128_v8  ;;  %137 = vmatpush.msra.mxu1 %v128_v8  ;;  %v72_v23 = vld [vmem:[#allocation5 + $0x10] sm:$0xff]  ;;  %v120_v24 = vld [vmem:[#allocation7 + $0x28] sm:$0xff]  ;;  %v119_v26 = vld [vmem:[#allocation7 + $0x20] sm:$0xff] }
  0x17   :  { %184 = vmatpush.msra.mxu2 %v81_v4  ;;  %94 = vmatpush.msra.mxu0 %v81_v4  ;;  %v71_v25 = vld [vmem:[#allocation5 + $0x8] sm:$0xff]  ;;  %v70_v27 = vld [vmem:[#allocation5] sm:$0xff]  ;;  %v69_v28 = vld [vmem:[#allocation2 + $0x8] sm:$0xff] }
  0x18   :  { %199 = vmatpush.msra.mxu3 %v127_v10  ;;  %138 = vmatpush.msra.mxu1 %v127_v10  ;;  %v68_v29 = vld [vmem:[#allocation2] sm:$0xff]  ;;  %v118_v30 = vld [vmem:[#allocation7 + $0x18] sm:$0xff]  ;;  %v116_v32 = vld [vmem:[#allocation7 + $0x8] sm:$0xff] }
  0x19   :  { %185 = vmatpush.msra.mxu2 %v80_v7  ;;  %95 = vmatpush.msra.mxu0 %v80_v7  ;;  %v117_v31 = vld [vmem:[#allocation7 + $0x10] sm:$0xff]  ;;  %v115_v33 = vld [vmem:[#allocation7] sm:$0xff] }
  0x1a   :  { %200 = vmatpush.msra.mxu3 %v126_v12  ;;  %139 = vmatpush.msra.mxu1 %v126_v12  ;;  %v218_v34 = vld [vmem:[%s390_s2] ss:$0 sm:$0xff]  ;;  %s166_s2 = sshll.u32 %s393_s5, 4  ;;  %s167_s2 = int_to_ptr.hbm [resolvable:$true] %s166_s2 }
  0x1b   :  { %186 = vmatpush.msra.mxu2 %v79_v9  ;;  %96 = vmatpush.msra.mxu0 %v79_v9  ;;  %v219_v41 = vld [vmem:[%s392_s4] ss:$0 sm:$0xff] }
  0x1c   :  { %201 = vmatpush.msra.mxu3 %v125_v14  ;;  %140 = vmatpush.msra.mxu1 %v125_v14 }
  0x1d   :  { %187 = vmatpush.msra.mxu2 %v78_v11  ;;  %97 = vmatpush.msra.mxu0 %v78_v11 }
  0x1e   :  { %202 = vmatpush.msra.mxu3 %v124_v16  ;;  %141 = vmatpush.msra.mxu1 %v124_v16 }
  0x1f   :  { %188 = vmatpush.msra.mxu2 %v77_v13  ;;  %98 = vmatpush.msra.mxu0 %v77_v13 }
  0x20   :  { %203 = vmatpush.msra.mxu3 %v123_v18  ;;  %142 = vmatpush.msra.mxu1 %v123_v18 }
  0x21   :  { %189 = vmatpush.msra.mxu2 %v76_v15  ;;  %99 = vmatpush.msra.mxu0 %v76_v15 }
  0x22   :  { %204 = vmatpush.msra.mxu3 %v122_v20  ;;  %143 = vmatpush.msra.mxu1 %v122_v20 }
  0x23   :  { %190 = vmatpush.msra.mxu2 %v75_v17  ;;  %100 = vmatpush.msra.mxu0 %v75_v17 }
  0x24   :  { %205 = vmatpush.msra.mxu3 %v121_v22  ;;  %144 = vmatpush.msra.mxu1 %v121_v22 }
  0x25   :  { %191 = vmatpush.msra.mxu2 %v74_v19  ;;  %101 = vmatpush.msra.mxu0 %v74_v19 }
  0x26   :  { %206 = vmatpush.msra.mxu3 %v120_v24  ;;  %145 = vmatpush.msra.mxu1 %v120_v24 }
  0x27   :  { %192 = vmatpush.msra.mxu2 %v73_v21  ;;  %102 = vmatpush.msra.mxu0 %v73_v21 }
  0x28   :  { %207 = vmatpush.msra.mxu3 %v119_v26  ;;  %146 = vmatpush.msra.mxu1 %v119_v26 }
  0x29   :  { %193 = vmatpush.msra.mxu2 %v72_v23  ;;  %103 = vmatpush.msra.mxu0 %v72_v23 }
  0x2a   :  { %208 = vmatpush.msra.mxu3 %v118_v30  ;;  %147 = vmatpush.msra.mxu1 %v118_v30 }
  0x2b   :  { %194 = vmatpush.msra.mxu2 %v71_v25  ;;  %104 = vmatpush.msra.mxu0 %v71_v25 }
  0x2c   :  { %209 = vmatpush.msra.mxu3 %v117_v31  ;;  %148 = vmatpush.msra.mxu1 %v117_v31 }
  0x2d   :  { %195 = vmatpush.msra.mxu2 %v70_v27  ;;  %105 = vmatpush.msra.mxu0 %v70_v27 }
  0x2e   :  { %109 = vmatmul.f32.vlgmr.msra.gmra.mxu2 %v69_v28  ;;  %106 = vmatmul.f32.vlgmr.msra.gmra.mxu0 %v68_v29 }
  0x2f   :  { %210 = vmatpush.msra.mxu3 %v116_v32  ;;  %149 = vmatpush.msra.mxu1 %v116_v32 }
  0x31   :  { %211 = vmatpush.msra.mxu3 %v115_v33  ;;  %150 = vmatpush.msra.mxu1 %v115_v33 }
  0xab   :  { %v107_v35 = vpop.f32.mrf.mxu0 }
  0xac   :  { %v108_v36 = vadd.f32 %v218_v34, %v107_v35 }
  0xae   :  { %v113_v37 = vmax.f32 %v108_v36, 0.0 }
  0xb0   :  { %151 = vmatmul.f32.vlgmr.msra.gmra.mxu1 %v113_v37 }
  0xb1   :  { %v110_v38 = vpop.f32.mrf.mxu2 }
  0xb2   :  { %v111_v39 = vadd.f32 %v218_v34, %v110_v38 }
  0xb4   :  { %v114_v40 = vmax.f32 %v111_v39, 0.0 }
  0xb6   :  { %154 = vmatmul.f32.vlgmr.msra.gmra.mxu3 %v114_v40 }
 0x12d   :  { %v152_v42 = vpop.f32.mrf.mxu1 }
 0x12e   :  { %v153_v43 = vadd.f32 %v219_v41, %v152_v42 }
 0x130   :  { %158 = vst [vmem:[#allocation8] sm:$0xff] %v153_v43 }
 0x139   :  { %v155_v44 = vpop.f32.mrf.mxu3 }
 0x13a   :  { %v156_v45 = vadd.f32 %v219_v41, %v155_v44 }
 0x13c   :  { %159 = vst [vmem:[#allocation8 + $0x8] sm:$0xff] %v156_v45 }
 0x13d   :  { %172 = dma.vmem_to_hbm [thread:$0]  %s165_s12, 256, %s167_s2, [#allocation4], %s323_s26, %s323_s26, %s324_s27  }
 0x13e   :  { %320 = dma.done.wait [#allocation4], 256  }
 0x13f   :  { %321 = vsyncadd [#allocation4], 4294967040 }
 0x140   :  { %177 = vsyncpa [#allocation3], 1 }
 0x141   :  { %178 = vsyncpa [#allocation6], 1 }
 0x142   :  { %179 = vsyncpa [#allocation4], 1 }

</bundles_post_ra>
